<compile_context>
chip_gen: v5e
topology: v5e:2x2
jax: 0.10.0
libtpu: 0.0.40
codegen_flags: <defaults>
</compile_context>

<pallas_src>
import jax
import jax.numpy as jnp
from jax.experimental import pallas as pl
from jax.experimental.pallas import tpu as pltpu

LANE = 128


def _round_up(x, m):
    return ((x + m - 1) // m) * m


def mlp_kernel(x_ref, w1_ref, w2_ref, w3_ref, b_ref, o_ref):
    h1_dim = w1_ref.shape[1]
    h2_dim = w2_ref.shape[1]

    # Layer 1: bf16 MXU matmul with f32 accumulation; bias add + ReLU in f32.
    h1 = jnp.dot(x_ref[...], w1_ref[...], preferred_element_type=jnp.float32)
    h1 = jnp.maximum(h1 + b_ref[0:1, 0:h1_dim], 0.0)

    # Layer 2: Linear + ReLU.
    h2 = jnp.dot(h1.astype(jnp.bfloat16), w2_ref[...],
                 preferred_element_type=jnp.float32)
    h2 = jnp.maximum(h2 + b_ref[1:2, 0:h2_dim], 0.0)

    # Layer 3 (output padded to 128 lanes): Linear + Sigmoid.
    logits = jnp.dot(h2.astype(jnp.bfloat16), w3_ref[...],
                     preferred_element_type=jnp.float32)
    logits = logits + b_ref[2:3, :]
    # exp on EUP; approx reciprocal also on EUP -> frees VALU slots.
    o_ref[...] = pl.reciprocal(1.0 + jnp.exp(-logits), approx=True)


def mlp_forward(x, params, *, batch_tile=512):
    (w1, b1), (w2, b2), (w3, b3) = params
    batch, in_features = x.shape
    h1_dim = w1.shape[1]
    h2_dim = w2.shape[1]
    num_classes = w3.shape[1]

    # Lane-dense output: pad the final feature dim to a multiple of 128 with
    # zero weight/bias columns (sliced off after the call).
    c_pad = _round_up(max(num_classes, LANE), LANE)
    w3p = jnp.zeros((h2_dim, c_pad), jnp.float32).at[:, :num_classes].set(w3)

    # Fold all biases into one lane-aligned f32 buffer (fewer DMA descriptors).
    b_all = jnp.zeros((3, c_pad), jnp.float32)
    b_all = b_all.at[0, :h1_dim].set(b1[0])
    b_all = b_all.at[1, :h2_dim].set(b2[0])
    b_all = b_all.at[2, :num_classes].set(b3[0])

    # bf16 matmul operands (halves streamed-activation traffic; f32 accumulate).
    x_bf = x.astype(jnp.bfloat16)
    w1_bf = w1.astype(jnp.bfloat16)
    w2_bf = w2.astype(jnp.bfloat16)
    w3_bf = w3p.astype(jnp.bfloat16)

    # Batch tiling: stream tb-row activation tiles over a 1-D grid.
    tb = min(_round_up(batch_tile, 8), _round_up(batch, 8))
    padded_batch = _round_up(batch, tb)
    if padded_batch != batch:
        x_bf = jnp.pad(x_bf, ((0, padded_batch - batch), (0, 0)))
    nb = pl.cdiv(padded_batch, tb)

    resident = lambda a: pl.BlockSpec(a.shape, lambda i: (0, 0))

    out_padded = pl.pallas_call(
        mlp_kernel,
        out_shape=jax.ShapeDtypeStruct((padded_batch, c_pad), jnp.float32),
        grid=(nb,),
        in_specs=[
            pl.BlockSpec((tb, in_features), lambda i: (i, 0)),  # streamed
            resident(w1_bf),                                    # VMEM-resident
            resident(w2_bf),
            resident(w3_bf),
            resident(b_all),
        ],
        out_specs=pl.BlockSpec((tb, c_pad), lambda i: (i, 0)),
        compiler_params=pltpu.CompilerParams(
            dimension_semantics=("parallel",),          # 2 TCs on v7x
            vmem_limit_bytes=32 * 1024 * 1024,          # safe on v7x's 64 MiB
        ),
    )(x_bf, w1_bf, w2_bf, w3_bf, b_all)

    return out_padded[:batch, :num_classes]


def init_linear(key, fan_in, fan_out):
    # Deterministic, PyTorch-Linear-style uniform(-1/sqrt(fan_in), 1/sqrt(fan_in)).
    kw, kb = jax.random.split(key)
    bound = 1.0 / jnp.sqrt(fan_in)
    w = jax.random.uniform(kw, (fan_in, fan_out), jnp.float32, -bound, bound)
    b = jax.random.uniform(kb, (1, fan_out), jnp.float32, -bound, bound)
    return w, b


def reference_mlp(x, params):
    (w1, b1), (w2, b2), (w3, b3) = params
    h1 = jnp.maximum(x @ w1 + b1, 0.0)
    h2 = jnp.maximum(h1 @ w2 + b2, 0.0)
    return jax.nn.sigmoid(h2 @ w3 + b3)


if __name__ == "__main__":
    hidden_sizes = [64, 32]
    input_size = 16     # stands in for X_train.shape[1]
    num_classes = 4     # stands in for y_train.shape[1]
    batch = 500         # non-multiple of the tile -> exercises batch padding

    key = jax.random.PRNGKey(0)
    kx, k1, k2, k3 = jax.random.split(key, 4)

    x = jax.random.normal(kx, (batch, input_size), jnp.float32)
    params = [
        init_linear(k1, input_size, hidden_sizes[0]),
        init_linear(k2, hidden_sizes[0], hidden_sizes[1]),
        init_linear(k3, hidden_sizes[1], num_classes),
    ]

    out = mlp_forward(x, params, batch_tile=256)   # 2 batch tiles
    jax.block_until_ready(out)

    ref = reference_mlp(x, params)
    assert out.shape == (batch, num_classes)
    # bf16 matmul operands + approx reciprocal -> loose-but-tight-enough tol.
    err = float(jnp.max(jnp.abs(out - ref)))
    assert jnp.allclose(out, ref, atol=3e-2, rtol=3e-2), err
    print("KERNEL_OK")
</pallas_src>

<mosaic_0001>
module attributes {stable_mosaic.version = 11 : i64} {
  func.func @mlp_kernel(%arg0: i32, %arg1: memref<256x16xbf16, #tpu.memory_space<vmem>>, %arg2: memref<16x64xbf16, #tpu.memory_space<vmem>>, %arg3: memref<64x32xbf16, #tpu.memory_space<vmem>>, %arg4: memref<32x128xbf16, #tpu.memory_space<vmem>>, %arg5: memref<3x128xf32, #tpu.memory_space<vmem>>, %arg6: memref<256x128xf32, #tpu.memory_space<vmem>>) attributes {dimension_semantics = [#tpu.dimension_semantics<parallel>], iteration_bounds = array<i64: 2>, scalar_prefetch = 0 : i64, scratch_operands = 0 : i64, tpu.core_type = #tpu.core_type<tc>, window_params = [{transform_indices = @transform_0, window_bounds = array<i64: 256, 16>}, {pipeline_mode = #tpu.pipeline_mode<synchronous>, transform_indices = @transform_1, window_bounds = array<i64: 16, 64>}, {pipeline_mode = #tpu.pipeline_mode<synchronous>, transform_indices = @transform_2, window_bounds = array<i64: 64, 32>}, {pipeline_mode = #tpu.pipeline_mode<synchronous>, transform_indices = @transform_3, window_bounds = array<i64: 32, 128>}, {pipeline_mode = #tpu.pipeline_mode<synchronous>, transform_indices = @transform_4, window_bounds = array<i64: 3, 128>}, {transform_indices = @transform_5, window_bounds = array<i64: 256, 128>}]} {
    %c0 = arith.constant 0 : index
    %c0_0 = arith.constant 0 : index
    %0 = vector.load %arg1[%c0, %c0_0] : memref<256x16xbf16, #tpu.memory_space<vmem>>, vector<256x16xbf16>
    %c0_1 = arith.constant 0 : index
    %c0_2 = arith.constant 0 : index
    %1 = vector.load %arg2[%c0_1, %c0_2] : memref<16x64xbf16, #tpu.memory_space<vmem>>, vector<16x64xbf16>
    %cst = arith.constant dense<0.000000e+00> : vector<256x64xf32>
    %2 = tpu.matmul %0, %1, %cst {dimension_numbers = #tpu.dot_dimension_numbers<[1], [0], [0], [1], [0, 0, 1, 1], [], []>} : vector<256x16xbf16>, vector<16x64xbf16>, vector<256x64xf32> -> vector<256x64xf32>
    %c0_3 = arith.constant 0 : index
    %c0_4 = arith.constant 0 : index
    %3 = vector.load %arg5[%c0_3, %c0_4] : memref<3x128xf32, #tpu.memory_space<vmem>>, vector<1x64xf32>
    %4 = vector.broadcast %3 : vector<1x64xf32> to vector<256x64xf32>
    %5 = arith.addf %2, %4 : vector<256x64xf32>
    %cst_5 = arith.constant 0.000000e+00 : f32
    %6 = vector.broadcast %cst_5 : f32 to vector<256x64xf32>
    %7 = arith.maximumf %5, %6 : vector<256x64xf32>
    %8 = arith.truncf %7 : vector<256x64xf32> to vector<256x64xbf16>
    %c0_6 = arith.constant 0 : index
    %c0_7 = arith.constant 0 : index
    %9 = vector.load %arg3[%c0_6, %c0_7] : memref<64x32xbf16, #tpu.memory_space<vmem>>, vector<64x32xbf16>
    %cst_8 = arith.constant dense<0.000000e+00> : vector<256x32xf32>
    %10 = tpu.matmul %8, %9, %cst_8 {dimension_numbers = #tpu.dot_dimension_numbers<[1], [0], [0], [1], [0, 0, 1, 1], [], []>} : vector<256x64xbf16>, vector<64x32xbf16>, vector<256x32xf32> -> vector<256x32xf32>
    %c1 = arith.constant 1 : index
    %c0_9 = arith.constant 0 : index
    %11 = vector.load %arg5[%c1, %c0_9] : memref<3x128xf32, #tpu.memory_space<vmem>>, vector<1x32xf32>
    %12 = vector.broadcast %11 : vector<1x32xf32> to vector<256x32xf32>
    %13 = arith.addf %10, %12 : vector<256x32xf32>
    %cst_10 = arith.constant 0.000000e+00 : f32
    %14 = vector.broadcast %cst_10 : f32 to vector<256x32xf32>
    %15 = arith.maximumf %13, %14 : vector<256x32xf32>
    %16 = arith.truncf %15 : vector<256x32xf32> to vector<256x32xbf16>
    %c0_11 = arith.constant 0 : index
    %c0_12 = arith.constant 0 : index
    %17 = vector.load %arg4[%c0_11, %c0_12] : memref<32x128xbf16, #tpu.memory_space<vmem>>, vector<32x128xbf16>
    %cst_13 = arith.constant dense<0.000000e+00> : vector<256x128xf32>
    %18 = tpu.matmul %16, %17, %cst_13 {dimension_numbers = #tpu.dot_dimension_numbers<[1], [0], [0], [1], [0, 0, 1, 1], [], []>} : vector<256x32xbf16>, vector<32x128xbf16>, vector<256x128xf32> -> vector<256x128xf32>
    %c2 = arith.constant 2 : index
    %c0_14 = arith.constant 0 : index
    %19 = vector.load %arg5[%c2, %c0_14] : memref<3x128xf32, #tpu.memory_space<vmem>>, vector<1x128xf32>
    %20 = vector.broadcast %19 : vector<1x128xf32> to vector<256x128xf32>
    %21 = arith.addf %18, %20 : vector<256x128xf32>
    %cst_15 = arith.constant 0.000000e+00 : f32
    %22 = vector.broadcast %cst_15 : f32 to vector<256x128xf32>
    %23 = arith.subf %22, %21 : vector<256x128xf32>
    %24 = math.exp %23 : vector<256x128xf32>
    %cst_16 = arith.constant 1.000000e+00 : f32
    %25 = vector.broadcast %cst_16 : f32 to vector<256x128xf32>
    %26 = arith.addf %25, %24 : vector<256x128xf32>
    %27 = tpu.reciprocal %26 {approx = true} : vector<256x128xf32> -> vector<256x128xf32>
    %c0_17 = arith.constant 0 : index
    %c0_18 = arith.constant 0 : index
    %28 = vector.load %arg6[%c0_17, %c0_18] : memref<256x128xf32, #tpu.memory_space<vmem>>, vector<256x128xf32>
    tpu.vector_store %arg6[%c0_17, %c0_18], %27 {strides = array<i32>} : memref<256x128xf32, #tpu.memory_space<vmem>>, vector<256x128xf32>,
    return
  }
  func.func @transform_0(%arg0: i32) -> (i32, i32) {
    %c0_i32 = arith.constant 0 : i32
    %c0_i32_0 = arith.constant 0 : i32
    return %arg0, %c0_i32 : i32, i32
  }
  func.func @transform_1(%arg0: i32) -> (i32, i32) {
    %c0_i32 = arith.constant 0 : i32
    %c0_i32_0 = arith.constant 0 : i32
    %c0_i32_1 = arith.constant 0 : i32
    return %c0_i32, %c0_i32_0 : i32, i32
  }
  func.func @transform_2(%arg0: i32) -> (i32, i32) {
    %c0_i32 = arith.constant 0 : i32
    %c0_i32_0 = arith.constant 0 : i32
    %c0_i32_1 = arith.constant 0 : i32
    return %c0_i32, %c0_i32_0 : i32, i32
  }
  func.func @transform_3(%arg0: i32) -> (i32, i32) {
    %c0_i32 = arith.constant 0 : i32
    %c0_i32_0 = arith.constant 0 : i32
    %c0_i32_1 = arith.constant 0 : i32
    return %c0_i32, %c0_i32_0 : i32, i32
  }
  func.func @transform_4(%arg0: i32) -> (i32, i32) {
    %c0_i32 = arith.constant 0 : i32
    %c0_i32_0 = arith.constant 0 : i32
    %c0_i32_1 = arith.constant 0 : i32
    return %c0_i32, %c0_i32_0 : i32, i32
  }
  func.func @transform_5(%arg0: i32) -> (i32, i32) {
    %c0_i32 = arith.constant 0 : i32
    %c0_i32_0 = arith.constant 0 : i32
    return %arg0, %c0_i32 : i32, i32
  }
}

</mosaic_0001>

<bundles_post_ra>
// kernel: tpu_custom_call.1
= control target key start
LH: loop header
LB: loop body
LE: loop exit
PB: predicated region body
PF: predicated region fallthrough
CT: control target
= control target key end

     0   :  { %10 = vsyncpa [#allocation3], 0  ;;  %s1953_s0 = inlined_call_operand.vmem [shape: bf16[512,16], index: 0, kind: input, shape index: {}]   ;;  %s1954_s1 = inlined_call_operand.vmem [shape: bf16[16,64], index: 1, kind: input, shape index: {}]   ;;  %s1955_s2 = inlined_call_operand.vmem [shape: bf16[64,32], index: 2, kind: input, shape index: {}]   ;;  %s1956_s3 = inlined_call_operand.vmem [shape: bf16[32,128], index: 3, kind: input, shape index: {}]   ;;  %s1957_s4 = inlined_call_operand.vmem [shape: f32[3,128], index: 4, kind: input, shape index: {}]   ;;  %s1958_s5 = inlined_call_operand.hbm [shape: f32[512,128], index: 5, kind: output, shape index: {}]  }
   0x1   :  { %12 = vsyncpa [#allocation3 + $0x1], 0  ;;  %s1632_s18 = smov 0   ;;  %s1634_s19 = smov 0  }
   0x2   :  { %s1636_s20 = smov 0   ;;  %s1638_s21 = smov 0  }
   0x3 LB: > { %s1653_s22 = sadd.s32 4294967295, %s1598_s21   ;;  %s1181_s23 = sadd.s32 4294967294, %s1598_s21   ;;  %s1598_s21 = sphi %s1638_s21, %s1964_s21   ;;  %s1594_s20 = sphi %s1636_s20, %s1963_s20   ;;  %s1590_s19 = sphi %s1634_s19, %s1962_s19   ;;  %s1586_s18 = sphi %s1632_s18, %s1961_s18  }
   0x4   : > { %s1657_s24 = sadd.s32 1, %s1598_s21   ;;  %s135_s25 = sadd.s32 1, %s1594_s20 }
   0x5   : > { %s132_s26 = ssub.s32 %s1598_s21, %s1657_s24  ;;  %p145_p0 = scmp.ne.s32.totalorder %s1594_s20, %s1590_s19 }
   0x6   : > { %p133_p1 = scmp.eq.s32.totalorder %s132_s26, 0  ;;  %p146_p2 = scmp.eq.s32.totalorder %s1653_s22, 1 }
   0x7   : > { %p151_p3 = scmp.ne.s32.totalorder %s1590_s19, %s1586_s18  ;;  %p152_p4 = scmp.eq.s32.totalorder %s1181_s23, 1 }
   0x8   : > { %s1668_s27 = scalar_select %p133_p1, %s1594_s20, %s135_s25  }
   0x9   : > { %p1670_p5 = por %p146_p2, %p145_p0  ;;  %p1674_p6 = por %p152_p4, %p151_p3 }
   0xa   : > { %p1184_p7 = scmp.ge.s32.totalorder %s1598_s21, 1  ;;  %p191_p8 = scmp.lt.s32.totalorder %s1598_s21, 3 }
   0xc   : > { %p192_p9 = pnand %p1184_p7, %p191_p8 }
   0xd   : > { %s1186_s7 = sshll.u32 (!%p192_p9), %s1653_s22, 5  ;;  %s216_s14 = sand.u32 (!%p192_p9), 1, %s1590_s19  }
   0xe   : > { %195 = sbr.rel (%p192_p9) target bundleno = 715 (0x2cb), region = 40  ;;  %p220_p10 = scmp.lt.s32.totalorder (!%p192_p9), %s1186_s7, 63 }
   0xf   : > { %s1185_s15 = sshll.u32 (!%p192_p9), %s216_s14, 8  ;;  %s1356_s17 = sshll.u32 (!%p192_p9), %s1653_s22, 8 }
  0x10   : > { %s1839_s16 = scalar_lea.vmem (!%p192_p9), [#allocation2], %s1185_s15  ;;  %s1115_s26 = scalar_lea.hbm (!%p192_p9), %s1958_s5, %s1356_s17 }
  0x11   : > { %s1116_s30 = sshll.u32 (!%p192_p9), %s1839_s16, 4  ;;  %s1118_s6 = sshll.u32 (!%p192_p9), %s1115_s26, 4  ;;  %s1117_s30 = int_to_ptr.vmem [resolvable:$true] %s1116_s30  ;;  %s1119_s6 = int_to_ptr.hbm [resolvable:$true] %s1118_s6 }
  0x13   : > { %v1349_v0 = vld [vmem:[%s1954_s1] sm:$0xff]  ;;  %s1966_s7 = smov (!%p220_p10, %s1186_s7), 63  ;;  %vm349_vm0 = vcmask 130048   ;;  %v1353_v7 = vld [vmem:[%s1955_s2 + $0x18] sm:$0xff]  ;;  %v1352_v9 = vld [vmem:[%s1955_s2 + $0x10] sm:$0xff]  ;;  %vm569_vm1 = vcmask 523264  }
  0x14   : > { %405 = vmatpush.bf16.msra.mxu0 %v1349_v0  ;;  %1357 = vmatpush.bf16.msra.mxu3 %v1349_v0  ;;  %s1187_s8 = sshll.u32 %s1966_s7, 2  ;;  %v1351_v10 = vld [vmem:[%s1955_s2 + $0x8] sm:$0xff]  ;;  %v1350_v11 = vld [vmem:[%s1955_s2] sm:$0xff]  ;;  %vm773_vm2 = vcmask 261120   ;;  %s1104_s7 = scalar_lea.sflag [#allocation3], %s216_s14 }
  0x15   : > { %s1687_s11 = scalar_lea.vmem %s1953_s0, %s1187_s8  ;;  %622 = vmatpush.bf16.msra.mxu1 %v1353_v7  ;;  %v1721_v15 = vld [vmem:[%s1957_s4] ss:$0 sm:$0xff]  ;;  %s1550_s8 = sshra.s32 %s1119_s6, 4  ;;  %s1551_s8 = int_to_ptr.hbm [resolvable:$true] %s1550_s8 }
  0x16   : > { %v1333_v1 = vld [vmem:[%s1687_s11] sm:$0xff]  ;;  %v1334_v2 = vld [vmem:[%s1687_s11 + $0x8] sm:$0xff]  ;;  %v1335_v3 = vld [vmem:[%s1687_s11 + $0x10] sm:$0xff]  ;;  %s1552_s22 = scalar_lea.hbm %s1551_s8, 256  ;;  %p1557_p0 = scmp.lt.s32.totalorder %s1551_s8, %s1958_s5 }
  0x17   : > { %1256 = vmatmul.msk.bf16.vlgmr.msra.gmra.mxu0 %vm349_vm0, %v1333_v1  ;;  %v1336_v4 = vld [vmem:[%s1687_s11 + $0x18] sm:$0xff]  ;;  %v1337_v5 = vld [vmem:[%s1687_s11 + $0x20] sm:$0xff]  ;;  %v1338_v6 = vld [vmem:[%s1687_s11 + $0x28] sm:$0xff]  ;;  %p1553_p11 = scmp.ne.s32.totalorder %s1551_s8, %s1552_s22 }
  0x18   : > { %v1339_v8 = vld [vmem:[%s1687_s11 + $0x30] sm:$0xff]  ;;  %1358 = vmatpush.bf16.msrb.mxu3 %v1353_v7  ;;  %v1340_v12 = vld [vmem:[%s1687_s11 + $0x38] sm:$0xff]  ;;  %v1341_v13 = vld [vmem:[%s1687_s11 + $0x40] sm:$0xff] }
  0x19   : > { %623 = vmatpush.bf16.msra.mxu1 %v1352_v9  ;;  %v1342_v22 = vld [vmem:[%s1687_s11 + $0x48] sm:$0xff]  ;;  %v1343_v30 = vld [vmem:[%s1687_s11 + $0x50] sm:$0xff]  ;;  %v1344_v39 = vld [vmem:[%s1687_s11 + $0x58] sm:$0xff]  ;;  %p1554_p12 = pnand %p1553_p11, %p1670_p5 }
  0x1a   : > { %v1346_v32 = vld [vmem:[%s1687_s11 + $0x68] sm:$0xff]  ;;  %v1347_v41 = vld [vmem:[%s1687_s11 + $0x70] sm:$0xff]  ;;  %v1345_v48 = vld [vmem:[%s1687_s11 + $0x60] sm:$0xff] }
  0x1b   : > { %1269 = vmatmul.msk.bf16.vlgmr.msra.gmra.mxu3 %vm349_vm0, %v1346_v32  ;;  %v1348_v50 = vld [vmem:[%s1687_s11 + $0x78] sm:$0xff]  ;;  %p1555_p13 = pneg %p1554_p12  ;;  %s1556_s11 = scalar_lea.hbm %s1958_s5, 512 }
  0x1c   : > { %1359 = vmatpush.bf16.msrb.mxu3 %v1352_v9  ;;  %v1354_v9 = vld [vmem:[%s1956_s3] sm:$0xff]  ;;  %p1558_p1 = scmp.lt.s32.totalorder %s1556_s11, %s1552_s22 }
  0x1d   : > { %624 = vmatpush.bf16.msra.mxu1 %v1351_v10 }
  0x1e   : > { %p1559_p2 = por %p1558_p1, %p1557_p0 }
  0x20   : > { %1360 = vmatpush.bf16.msrb.mxu3 %v1351_v10  ;;  %p1560_p3 = pnand %p1559_p2, %p1555_p13 }
  0x21   : > { %625 = vmatpush.bf16.msra.mxu1 %v1350_v11 }
  0x24   : > { %1361 = vmatpush.bf16.msrb.mxu3 %v1350_v11 }
  0x27   : > { %1257 = vmatmul.msk.bf16.gmra.mxu0 %vm349_vm0, %v1334_v2 }
  0x2b   : > { %1270 = vmatmul.msk.bf16.gmra.mxu3 %vm349_vm0, %v1347_v41 }
  0x37   : > { %1258 = vmatmul.msk.bf16.gmra.mxu0 %vm349_vm0, %v1335_v3 }
  0x3b   : > { %1271 = vmatmul.msk.bf16.gmra.mxu3 %vm349_vm0, %v1348_v50 }
  0x47   : > { %1259 = vmatmul.msk.bf16.gmra.mxu0 %vm349_vm0, %v1336_v4 }
  0x57   : > { %1260 = vmatmul.msk.bf16.gmra.mxu0 %vm349_vm0, %v1337_v5 }
  0x67   : > { %1261 = vmatmul.msk.bf16.gmra.mxu0 %vm349_vm0, %v1338_v6 }
  0x77   : > { %1262 = vmatmul.msk.bf16.gmra.mxu0 %vm349_vm0, %v1339_v8  ;;  %v1355_v8 = vld [vmem:[%s1956_s3 + $0x8] sm:$0xff] }
  0x78   : > { %828 = vmatpush.bf16.msra.mxu2 %v1355_v8  ;;  %1362 = vmatpush.bf16.msra.mxu3 %v1355_v8 }
  0x7c   : > { %829 = vmatpush.bf16.msra.mxu2 %v1354_v9  ;;  %1363 = vmatpush.bf16.msra.mxu3 %v1354_v9 }
  0x87   : > { %1263 = vmatmul.msk.bf16.gmra.mxu0 %vm349_vm0, %v1340_v12 }
  0x94   : > { %v407_v14 = vpop.f32.mrf.mxu0 }
  0x95   : > { %v408_v16 = vadd.f32 %v1721_v15, %v407_v14 }
  0x97   : > { %1264 = vmatmul.msk.bf16.gmra.mxu0 %vm349_vm0, %v1341_v13  ;;  %v487_v19 = vmax.f32 %v408_v16, 0.0 }
  0x9c   : > { %v409_v17 = vpop.f32.mrf.mxu0 }
  0x9d   : > { %v410_v18 = vadd.f32 %v1721_v15, %v409_v17 }
  0x9f   : > { %v488_v20 = vmax.f32 %v410_v18, 0.0 }
  0xa1   : > { %v519_v21 = vpack.c.bf16 %v488_v20, %v487_v19 }
  0xa3   : > { %1288 = vmatmul.msk.bf16.vlgmr.msra.gmra.mxu1 %vm569_vm1, %v519_v21 }
  0xa4   : > { %v412_v23 = vpop.f32.mrf.mxu0 }
  0xa5   : > { %v413_v24 = vadd.f32 %v1721_v15, %v412_v23 }
  0xa7   : > { %1265 = vmatmul.msk.bf16.gmra.mxu0 %vm349_vm0, %v1342_v22  ;;  %v489_v27 = vmax.f32 %v413_v24, 0.0 }
  0xac   : > { %v414_v25 = vpop.f32.mrf.mxu0 }
  0xad   : > { %v415_v26 = vadd.f32 %v1721_v15, %v414_v25  ;;  %v1773_v25 = vld [vmem:[%s1957_s4 + $0x1] ss:$0 sm:$0xff] }
  0xaf   : > { %v490_v28 = vmax.f32 %v415_v26, 0.0 }
  0xb1   : > { %v520_v29 = vpack.c.bf16 %v490_v28, %v489_v27 }
  0xb3   : > { %1289 = vmatmul.msk.bf16.gmra.mxu1 %vm569_vm1, %v520_v29 }
  0xb4   : > { %v417_v31 = vpop.f32.mrf.mxu0 }
  0xb5   : > { %v418_v33 = vadd.f32 %v1721_v15, %v417_v31 }
  0xb7   : > { %1266 = vmatmul.msk.bf16.gmra.mxu0 %vm349_vm0, %v1343_v30  ;;  %v491_v36 = vmax.f32 %v418_v33, 0.0 }
  0xbc   : > { %v419_v34 = vpop.f32.mrf.mxu0 }
  0xbd   : > { %v420_v35 = vadd.f32 %v1721_v15, %v419_v34 }
  0xbf   : > { %v492_v37 = vmax.f32 %v420_v35, 0.0 }
  0xc1   : > { %v521_v38 = vpack.c.bf16 %v492_v37, %v491_v36 }
  0xc3   : > { %1290 = vmatmul.msk.bf16.gmra.mxu1 %vm569_vm1, %v521_v38 }
  0xc4   : > { %v422_v40 = vpop.f32.mrf.mxu0 }
  0xc5   : > { %v423_v42 = vadd.f32 %v1721_v15, %v422_v40 }
  0xc7   : > { %1267 = vmatmul.msk.bf16.gmra.mxu0 %vm349_vm0, %v1344_v39  ;;  %v493_v45 = vmax.f32 %v423_v42, 0.0 }
  0xcc   : > { %v424_v43 = vpop.f32.mrf.mxu0 }
  0xcd   : > { %v425_v44 = vadd.f32 %v1721_v15, %v424_v43 }
  0xcf   : > { %v494_v46 = vmax.f32 %v425_v44, 0.0 }
  0xd1   : > { %v522_v47 = vpack.c.bf16 %v494_v46, %v493_v45 }
  0xd3   : > { %1291 = vmatmul.msk.bf16.gmra.mxu1 %vm569_vm1, %v522_v47 }
  0xd4   : > { %v427_v49 = vpop.f32.mrf.mxu0 }
  0xd5   : > { %v428_v51 = vadd.f32 %v1721_v15, %v427_v49 }
  0xd7   : > { %1268 = vmatmul.msk.bf16.gmra.mxu0 %vm349_vm0, %v1345_v48  ;;  %v495_v54 = vmax.f32 %v428_v51, 0.0 }
  0xdc   : > { %v429_v52 = vpop.f32.mrf.mxu0 }
  0xdd   : > { %v430_v53 = vadd.f32 %v1721_v15, %v429_v52 }
  0xdf   : > { %v496_v55 = vmax.f32 %v430_v53, 0.0 }
  0xe1   : > { %v523_v56 = vpack.c.bf16 %v496_v55, %v495_v54 }
  0xe3   : > { %1292 = vmatmul.msk.bf16.gmra.mxu1 %vm569_vm1, %v523_v56 }
  0xe4   : > { %v432_v57 = vpop.f32.mrf.mxu0 }
  0xe5   : > { %v433_v58 = vadd.f32 %v1721_v15, %v432_v57 }
  0xe7   : > { %v497_v61 = vmax.f32 %v433_v58, 0.0 }
  0xec   : > { %v434_v59 = vpop.f32.mrf.mxu0 }
  0xed   : > { %v435_v60 = vadd.f32 %v1721_v15, %v434_v59 }
  0xef   : > { %v498_v62 = vmax.f32 %v435_v60, 0.0 }
  0xf1   : > { %v524_v63 = vpack.c.bf16 %v498_v62, %v497_v61 }
  0xf3   : > { %1293 = vmatmul.msk.bf16.gmra.mxu1 %vm569_vm1, %v524_v63 }
  0xf4   : > { %v437_v0 = vpop.f32.mrf.mxu0 }
  0xf5   : > { %v438_v1 = vadd.f32 %v1721_v15, %v437_v0 }
  0xf7   : > { %v499_v4 = vmax.f32 %v438_v1, 0.0 }
  0xfc   : > { %v439_v2 = vpop.f32.mrf.mxu0 }
  0xfd   : > { %v440_v3 = vadd.f32 %v1721_v15, %v439_v2 }
  0xff   : > { %v500_v5 = vmax.f32 %v440_v3, 0.0 }
 0x101   : > { %v525_v6 = vpack.c.bf16 %v500_v5, %v499_v4  ;;  %v472_v5 = vpop.f32.mrf.mxu3 }
 0x103   : > { %1294 = vmatmul.msk.bf16.gmra.mxu1 %vm569_vm1, %v525_v6 }
 0x104   : > { %v442_v7 = vpop.f32.mrf.mxu0 }
 0x105   : > { %v443_v10 = vadd.f32 %v1721_v15, %v442_v7 }
 0x107   : > { %v501_v13 = vmax.f32 %v443_v10, 0.0 }
 0x10c   : > { %v444_v11 = vpop.f32.mrf.mxu0 }
 0x10d   : > { %v445_v12 = vadd.f32 %v1721_v15, %v444_v11 }
 0x10f   : > { %v502_v14 = vmax.f32 %v445_v12, 0.0 }
 0x111   : > { %v526_v16 = vpack.c.bf16 %v502_v14, %v501_v13 }
 0x113   : > { %1295 = vmatmul.msk.bf16.gmra.mxu1 %vm569_vm1, %v526_v16  ;;  %v474_v16 = vpop.f32.mrf.mxu3 }
 0x114   : > { %v447_v17 = vpop.f32.mrf.mxu0 }
 0x115   : > { %v448_v18 = vadd.f32 %v1721_v15, %v447_v17 }
 0x117   : > { %v503_v21 = vmax.f32 %v448_v18, 0.0 }
 0x11c   : > { %v449_v19 = vpop.f32.mrf.mxu0 }
 0x11d   : > { %v450_v20 = vadd.f32 %v1721_v15, %v449_v19 }
 0x11f   : > { %v504_v22 = vmax.f32 %v450_v20, 0.0 }
 0x120   : > { %v627_v23 = vpop.f32.mrf.mxu1 }
 0x121   : > { %v527_v24 = vpack.c.bf16 %v504_v22, %v503_v21  ;;  %v628_v27 = vadd.f32 %v1773_v25, %v627_v23  ;;  %v477_v23 = vpop.f32.mrf.mxu3 }
 0x123   : > { %1296 = vmatmul.msk.bf16.gmra.mxu1 %vm569_vm1, %v527_v24  ;;  %v707_v30 = vmax.f32 %v628_v27, 0.0  ;;  %v473_v24 = vadd.f32 %v1721_v15, %v472_v5 }
 0x124   : > { %v452_v26 = vpop.f32.mrf.mxu0 }
 0x125   : > { %v453_v31 = vadd.f32 %v1721_v15, %v452_v26  ;;  %v475_v26 = vadd.f32 %v1721_v15, %v474_v16 }
 0x127   : > { %v505_v36 = vmax.f32 %v453_v31, 0.0  ;;  %v514_v31 = vmax.f32 %v475_v26, 0.0 }
 0x128   : > { %v629_v28 = vpop.f32.mrf.mxu1 }
 0x129   : > { %v630_v29 = vadd.f32 %v1773_v25, %v629_v28 }
 0x12b   : > { %v708_v32 = vmax.f32 %v630_v29, 0.0 }
 0x12c   : > { %v454_v33 = vpop.f32.mrf.mxu0 }
 0x12d   : > { %v739_v34 = vpack.c.bf16 %v708_v32, %v707_v30  ;;  %v455_v35 = vadd.f32 %v1721_v15, %v454_v33  ;;  %v513_v30 = vmax.f32 %v473_v24, 0.0 }
 0x12f   : > { %v506_v37 = vmax.f32 %v455_v35, 0.0  ;;  %1312 = vmatmul.msk.bf16.vlgmr.msra.gmra.mxu2 %vm773_vm2, %v739_v34  ;;  %v532_v34 = vpack.c.bf16 %v514_v31, %v513_v30  ;;  %v479_v35 = vpop.f32.mrf.mxu3 }
 0x130   : > { %v632_v38 = vpop.f32.mrf.mxu1 }
 0x131   : > { %v528_v39 = vpack.c.bf16 %v506_v37, %v505_v36  ;;  %v633_v41 = vadd.f32 %v1773_v25, %v632_v38  ;;  %v478_v38 = vadd.f32 %v1721_v15, %v477_v23 }
 0x133   : > { %1297 = vmatmul.msk.bf16.gmra.mxu1 %vm569_vm1, %v528_v39  ;;  %v709_v44 = vmax.f32 %v633_v41, 0.0  ;;  %v480_v39 = vadd.f32 %v1721_v15, %v479_v35 }
 0x134   : > { %v457_v40 = vpop.f32.mrf.mxu0 }
 0x135   : > { %v458_v45 = vadd.f32 %v1721_v15, %v457_v40 }
 0x137   : > { %v507_v50 = vmax.f32 %v458_v45, 0.0  ;;  %v516_v45 = vmax.f32 %v480_v39, 0.0 }
 0x138   : > { %v634_v42 = vpop.f32.mrf.mxu1 }
 0x139   : > { %v635_v43 = vadd.f32 %v1773_v25, %v634_v42 }
 0x13b   : > { %v710_v46 = vmax.f32 %v635_v43, 0.0  ;;  %v482_v43 = vpop.f32.mrf.mxu3 }
 0x13c   : > { %v459_v47 = vpop.f32.mrf.mxu0 }
 0x13d   : > { %v740_v48 = vpack.c.bf16 %v710_v46, %v709_v44  ;;  %v460_v49 = vadd.f32 %v1721_v15, %v459_v47  ;;  %v515_v44 = vmax.f32 %v478_v38, 0.0 }
 0x13f   : > { %v508_v51 = vmax.f32 %v460_v49, 0.0  ;;  %1313 = vmatmul.msk.bf16.gmra.mxu2 %vm773_vm2, %v740_v48  ;;  %v533_v48 = vpack.c.bf16 %v516_v45, %v515_v44 }
 0x140   : > { %v637_v52 = vpop.f32.mrf.mxu1 }
 0x141   : > { %v529_v53 = vpack.c.bf16 %v508_v51, %v507_v50  ;;  %v638_v55 = vadd.f32 %v1773_v25, %v637_v52  ;;  %v483_v52 = vadd.f32 %v1721_v15, %v482_v43 }
 0x143   : > { %1298 = vmatmul.msk.bf16.gmra.mxu1 %vm569_vm1, %v529_v53  ;;  %v711_v58 = vmax.f32 %v638_v55, 0.0  ;;  %v484_v49 = vpop.f32.mrf.mxu3 }
 0x144   : > { %v462_v54 = vpop.f32.mrf.mxu0  ;;  %v485_v53 = vadd.f32 %v1721_v15, %v484_v49 }
 0x145   : > { %v463_v59 = vadd.f32 %v1721_v15, %v462_v54 }
 0x147   : > { %v509_v0 = vmax.f32 %v463_v59, 0.0 }
 0x148   : > { %v639_v56 = vpop.f32.mrf.mxu1 }
 0x149   : > { %v640_v57 = vadd.f32 %v1773_v25, %v639_v56 }
 0x14b   : > { %v712_v60 = vmax.f32 %v640_v57, 0.0  ;;  %v517_v57 = vmax.f32 %v483_v52, 0.0 }
 0x14c   : > { %v464_v61 = vpop.f32.mrf.mxu0 }
 0x14d   : > { %v741_v62 = vpack.c.bf16 %v712_v60, %v711_v58  ;;  %v465_v63 = vadd.f32 %v1721_v15, %v464_v61  ;;  %v518_v58 = vmax.f32 %v485_v53, 0.0 }
 0x14f   : > { %v510_v1 = vmax.f32 %v465_v63, 0.0  ;;  %1314 = vmatmul.msk.bf16.gmra.mxu2 %vm773_vm2, %v741_v62  ;;  %v534_v61 = vpack.c.bf16 %v518_v58, %v517_v57 }
 0x150   : > { %v642_v2 = vpop.f32.mrf.mxu1 }
 0x151   : > { %v530_v3 = vpack.c.bf16 %v510_v1, %v509_v0  ;;  %v643_v6 = vadd.f32 %v1773_v25, %v642_v2 }
 0x153   : > { %1299 = vmatmul.msk.bf16.gmra.mxu1 %vm569_vm1, %v530_v3  ;;  %v713_v9 = vmax.f32 %v643_v6, 0.0 }
 0x154   : > { %v467_v4 = vpop.f32.mrf.mxu0 }
 0x155   : > { %v468_v10 = vadd.f32 %v1721_v15, %v467_v4 }
 0x157   : > { %v511_v17 = vmax.f32 %v468_v10, 0.0  ;;  %v1827_v10 = vld [vmem:[%s1957_s4 + $0x2] ss:$0 sm:$0xff] }
 0x158   : > { %v644_v7 = vpop.f32.mrf.mxu1 }
 0x159   : > { %v645_v8 = vadd.f32 %v1773_v25, %v644_v7 }
 0x15b   : > { %v714_v11 = vmax.f32 %v645_v8, 0.0 }
 0x15c   : > { %v469_v12 = vpop.f32.mrf.mxu0 }
 0x15d   : > { %v742_v13 = vpack.c.bf16 %v714_v11, %v713_v9  ;;  %v470_v14 = vadd.f32 %v1721_v15, %v469_v12 }
 0x15f   : > { %v512_v18 = vmax.f32 %v470_v14, 0.0  ;;  %1315 = vmatmul.msk.bf16.gmra.mxu2 %vm773_vm2, %v742_v13 }
 0x160   : > { %v647_v19 = vpop.f32.mrf.mxu1 }
 0x161   : > { %v531_v20 = vpack.c.bf16 %v512_v18, %v511_v17  ;;  %v648_v21 = vadd.f32 %v1773_v25, %v647_v19 }
 0x163   : > { %1300 = vmatmul.msk.bf16.vlgmr.msrb.gmra.mxu3 %vm569_vm1, %v531_v20  ;;  %v715_v28 = vmax.f32 %v648_v21, 0.0 }
 0x168   : > { %v649_v22 = vpop.f32.mrf.mxu1 }
 0x169   : > { %v650_v27 = vadd.f32 %v1773_v25, %v649_v22 }
 0x16b   : > { %v716_v29 = vmax.f32 %v650_v27, 0.0 }
 0x16d   : > { %v743_v32 = vpack.c.bf16 %v716_v29, %v715_v28 }
 0x16f   : > { %1316 = vmatmul.msk.bf16.gmra.mxu2 %vm773_vm2, %v743_v32 }
 0x170   : > { %v652_v33 = vpop.f32.mrf.mxu1 }
 0x171   : > { %v653_v36 = vadd.f32 %v1773_v25, %v652_v33 }
 0x173   : > { %1301 = vmatmul.msk.bf16.gmra.mxu3 %vm569_vm1, %v532_v34  ;;  %v717_v41 = vmax.f32 %v653_v36, 0.0 }
 0x178   : > { %v654_v37 = vpop.f32.mrf.mxu1 }
 0x179   : > { %v655_v40 = vadd.f32 %v1773_v25, %v654_v37 }
 0x17b   : > { %v718_v42 = vmax.f32 %v655_v40, 0.0 }
 0x17d   : > { %v744_v46 = vpack.c.bf16 %v718_v42, %v717_v41 }
 0x17f   : > { %1317 = vmatmul.msk.bf16.gmra.mxu2 %vm773_vm2, %v744_v46 }
 0x180   : > { %v657_v47 = vpop.f32.mrf.mxu1 }
 0x181   : > { %v658_v50 = vadd.f32 %v1773_v25, %v657_v47 }
 0x183   : > { %1302 = vmatmul.msk.bf16.gmra.mxu3 %vm569_vm1, %v533_v48  ;;  %v719_v55 = vmax.f32 %v658_v50, 0.0 }
 0x188   : > { %v659_v51 = vpop.f32.mrf.mxu1 }
 0x189   : > { %v660_v54 = vadd.f32 %v1773_v25, %v659_v51 }
 0x18b   : > { %v720_v56 = vmax.f32 %v660_v54, 0.0 }
 0x18d   : > { %v745_v59 = vpack.c.bf16 %v720_v56, %v719_v55 }
 0x18f   : > { %1318 = vmatmul.msk.bf16.gmra.mxu2 %vm773_vm2, %v745_v59 }
 0x190   : > { %v662_v60 = vpop.f32.mrf.mxu1 }
 0x191   : > { %v663_v62 = vadd.f32 %v1773_v25, %v662_v60 }
 0x193   : > { %1303 = vmatmul.msk.bf16.gmra.mxu3 %vm569_vm1, %v534_v61  ;;  %v721_v1 = vmax.f32 %v663_v62, 0.0 }
 0x198   : > { %v664_v63 = vpop.f32.mrf.mxu1 }
 0x199   : > { %v665_v0 = vadd.f32 %v1773_v25, %v664_v63 }
 0x19b   : > { %v722_v15 = vmax.f32 %v665_v0, 0.0 }
 0x19d   : > { %v746_v2 = vpack.c.bf16 %v722_v15, %v721_v1 }
 0x19f   : > { %1319 = vmatmul.msk.bf16.gmra.mxu2 %vm773_vm2, %v746_v2 }
 0x1a0   : > { %v667_v3 = vpop.f32.mrf.mxu1 }
 0x1a1   : > { %v668_v4 = vadd.f32 %v1773_v25, %v667_v3 }
 0x1a3   : > { %v723_v7 = vmax.f32 %v668_v4, 0.0 }
 0x1a8   : > { %v669_v5 = vpop.f32.mrf.mxu1 }
 0x1a9   : > { %v670_v6 = vadd.f32 %v1773_v25, %v669_v5 }
 0x1ab   : > { %v724_v8 = vmax.f32 %v670_v6, 0.0 }
 0x1ad   : > { %v747_v9 = vpack.c.bf16 %v724_v8, %v723_v7 }
 0x1af   : > { %1320 = vmatmul.msk.bf16.gmra.mxu2 %vm773_vm2, %v747_v9 }
 0x1b0   : > { %v672_v11 = vpop.f32.mrf.mxu1 }
 0x1b1   : > { %v673_v16 = vadd.f32 %v1773_v25, %v672_v11 }
 0x1b2   : > { %v831_v12 = vpop.f32.mrf.mxu2 }
 0x1b3   : > { %v832_v13 = vadd.f32 %v1827_v10, %v831_v12  ;;  %v725_v21 = vmax.f32 %v673_v16, 0.0 }
 0x1b5   : > { %v911_v14 = vsub.f32 0.0, %v832_v13 }
 0x1b7   : > { %v943_v17 = vmul.f32 1.442695, %v911_v14 }
 0x1b8   : > { %v674_v18 = vpop.f32.mrf.mxu1 }
 0x1b9   : > { %1408 = vpow2.f32 %v943_v17  ;;  %v675_v19 = vadd.f32 %v1773_v25, %v674_v18 }
 0x1ba   : > { %v833_v20 = vpop.f32.mrf.mxu2 }
 0x1bb   : > { %v726_v22 = vmax.f32 %v675_v19, 0.0  ;;  %v834_v23 = vadd.f32 %v1827_v10, %v833_v20 }
 0x1bd   : > { %v748_v24 = vpack.c.bf16 %v726_v22, %v725_v21  ;;  %v912_v26 = vsub.f32 0.0, %v834_v23 }
 0x1bf   : > { %v1409_v27 = vpop.eup %1408  ;;  %v945_v28 = vmul.f32 1.442695, %v912_v26  ;;  %1321 = vmatmul.msk.bf16.gmra.mxu2 %vm773_vm2, %v748_v24 }
 0x1c0   : > { %v1007_v29 = vadd.f32 1.0, %v1409_v27  ;;  %v677_v30 = vpop.f32.mrf.mxu1 }
 0x1c1   : > { %1410 = vpow2.f32 %v945_v28  ;;  %v678_v35 = vadd.f32 %v1773_v25, %v677_v30 }
 0x1c2   : > { %1412 = vrcp.f32 %v1007_v29  ;;  %v836_v31 = vpop.f32.mrf.mxu2 }
 0x1c3   : > { %v837_v32 = vadd.f32 %v1827_v10, %v836_v31  ;;  %v727_v42 = vmax.f32 %v678_v35, 0.0 }
 0x1c5   : > { %v913_v33 = vsub.f32 0.0, %v837_v32 }
 0x1c7   : > { %v1411_v34 = vpop.eup %1410  ;;  %v947_v36 = vmul.f32 1.442695, %v913_v33 }
 0x1c8   : > { %v1413_v37 = vpop.eup %1412  ;;  %v1008_v38 = vadd.f32 1.0, %v1411_v34  ;;  %v679_v39 = vpop.f32.mrf.mxu1 }
 0x1c9   : > { %1071 = vst [vmem:[%s1839_s16] sm:$0xff] %v1413_v37  ;;  %1414 = vpow2.f32 %v947_v36  ;;  %v680_v40 = vadd.f32 %v1773_v25, %v679_v39 }
 0x1ca   : > { %1416 = vrcp.f32 %v1008_v38  ;;  %v838_v41 = vpop.f32.mrf.mxu2 }
 0x1cb   : > { %v728_v43 = vmax.f32 %v680_v40, 0.0  ;;  %v839_v44 = vadd.f32 %v1827_v10, %v838_v41 }
 0x1cd   : > { %v749_v45 = vpack.c.bf16 %v728_v43, %v727_v42  ;;  %v914_v46 = vsub.f32 0.0, %v839_v44 }
 0x1cf   : > { %v1415_v47 = vpop.eup %1414  ;;  %v949_v48 = vmul.f32 1.442695, %v914_v46  ;;  %1322 = vmatmul.msk.bf16.gmra.mxu2 %vm773_vm2, %v749_v45 }
 0x1d0   : > { %v1417_v49 = vpop.eup %1416  ;;  %v1009_v50 = vadd.f32 1.0, %v1415_v47  ;;  %v682_v51 = vpop.f32.mrf.mxu1 }
 0x1d1   : > { %1072 = vst [vmem:[%s1839_s16 + $0x8] sm:$0xff] %v1417_v49  ;;  %1418 = vpow2.f32 %v949_v48  ;;  %v683_v56 = vadd.f32 %v1773_v25, %v682_v51 }
 0x1d2   : > { %1420 = vrcp.f32 %v1009_v50  ;;  %v841_v52 = vpop.f32.mrf.mxu2 }
 0x1d3   : > { %v842_v53 = vadd.f32 %v1827_v10, %v841_v52  ;;  %v729_v63 = vmax.f32 %v683_v56, 0.0 }
 0x1d5   : > { %v915_v54 = vsub.f32 0.0, %v842_v53 }
 0x1d7   : > { %v1419_v55 = vpop.eup %1418  ;;  %v951_v57 = vmul.f32 1.442695, %v915_v54 }
 0x1d8   : > { %v1421_v58 = vpop.eup %1420  ;;  %v1010_v59 = vadd.f32 1.0, %v1419_v55  ;;  %v684_v60 = vpop.f32.mrf.mxu1 }
 0x1d9   : > { %1073 = vst [vmem:[%s1839_s16 + $0x10] sm:$0xff] %v1421_v58  ;;  %1422 = vpow2.f32 %v951_v57  ;;  %v685_v61 = vadd.f32 %v1773_v25, %v684_v60 }
 0x1da   : > { %1424 = vrcp.f32 %v1010_v59  ;;  %v843_v62 = vpop.f32.mrf.mxu2 }
 0x1db   : > { %v730_v0 = vmax.f32 %v685_v61, 0.0  ;;  %v844_v1 = vadd.f32 %v1827_v10, %v843_v62 }
 0x1dd   : > { %v750_v15 = vpack.c.bf16 %v730_v0, %v729_v63  ;;  %v916_v2 = vsub.f32 0.0, %v844_v1 }
 0x1df   : > { %v1423_v3 = vpop.eup %1422  ;;  %v953_v4 = vmul.f32 1.442695, %v916_v2  ;;  %1323 = vmatmul.msk.bf16.gmra.mxu2 %vm773_vm2, %v750_v15 }
 0x1e0   : > { %v1425_v5 = vpop.eup %1424  ;;  %v1011_v6 = vadd.f32 1.0, %v1423_v3 }
 0x1e1   : > { %1074 = vst [vmem:[%s1839_s16 + $0x18] sm:$0xff] %v1425_v5  ;;  %1426 = vpow2.f32 %v953_v4 }
 0x1e2   : > { %1428 = vrcp.f32 %v1011_v6  ;;  %v846_v7 = vpop.f32.mrf.mxu2 }
 0x1e3   : > { %v847_v8 = vadd.f32 %v1827_v10, %v846_v7 }
 0x1e5   : > { %v917_v9 = vsub.f32 0.0, %v847_v8 }
 0x1e6   : > { %v687_v11 = vpop.f32.mrf.mxu3 }
 0x1e7   : > { %v1427_v12 = vpop.eup %1426  ;;  %v955_v13 = vmul.f32 1.442695, %v917_v9  ;;  %v688_v19 = vadd.f32 %v1773_v25, %v687_v11 }
 0x1e8   : > { %v1429_v14 = vpop.eup %1428  ;;  %v1012_v16 = vadd.f32 1.0, %v1427_v12 }
 0x1e9   : > { %1075 = vst [vmem:[%s1839_s16 + $0x20] sm:$0xff] %v1429_v14  ;;  %1430 = vpow2.f32 %v955_v13  ;;  %v731_v28 = vmax.f32 %v688_v19, 0.0 }
 0x1ea   : > { %1432 = vrcp.f32 %v1012_v16  ;;  %v848_v17 = vpop.f32.mrf.mxu2 }
 0x1eb   : > { %v849_v18 = vadd.f32 %v1827_v10, %v848_v17 }
 0x1ed   : > { %v918_v20 = vsub.f32 0.0, %v849_v18 }
 0x1ee   : > { %v689_v21 = vpop.f32.mrf.mxu3 }
 0x1ef   : > { %v1431_v22 = vpop.eup %1430  ;;  %v957_v23 = vmul.f32 1.442695, %v918_v20  ;;  %v690_v24 = vadd.f32 %v1773_v25, %v689_v21 }
 0x1f0   : > { %v1433_v26 = vpop.eup %1432  ;;  %v1013_v27 = vadd.f32 1.0, %v1431_v22 }
 0x1f1   : > { %1076 = vst [vmem:[%s1839_s16 + $0x28] sm:$0xff] %v1433_v26  ;;  %1434 = vpow2.f32 %v957_v23  ;;  %v732_v29 = vmax.f32 %v690_v24, 0.0 }
 0x1f2   : > { %1436 = vrcp.f32 %v1013_v27  ;;  %v851_v30 = vpop.f32.mrf.mxu2 }
 0x1f3   : > { %v751_v31 = vpack.c.bf16 %v732_v29, %v731_v28  ;;  %v852_v32 = vadd.f32 %v1827_v10, %v851_v30 }
 0x1f5   : > { %v919_v33 = vsub.f32 0.0, %v852_v32  ;;  %1324 = vmatmul.msk.bf16.vlgmr.msra.gmra.mxu3 %vm773_vm2, %v751_v31 }
 0x1f6   : > { %v692_v34 = vpop.f32.mrf.mxu3 }
 0x1f7   : > { %v1435_v35 = vpop.eup %1434  ;;  %v959_v36 = vmul.f32 1.442695, %v919_v33  ;;  %v693_v41 = vadd.f32 %v1773_v25, %v692_v34 }
 0x1f8   : > { %v1437_v37 = vpop.eup %1436  ;;  %v1014_v38 = vadd.f32 1.0, %v1435_v35 }
 0x1f9   : > { %1077 = vst [vmem:[%s1839_s16 + $0x30] sm:$0xff] %v1437_v37  ;;  %1438 = vpow2.f32 %v959_v36  ;;  %v733_v49 = vmax.f32 %v693_v41, 0.0 }
 0x1fa   : > { %1440 = vrcp.f32 %v1014_v38  ;;  %v853_v39 = vpop.f32.mrf.mxu2 }
 0x1fb   : > { %v854_v40 = vadd.f32 %v1827_v10, %v853_v39 }
 0x1fd   : > { %v920_v42 = vsub.f32 0.0, %v854_v40 }
 0x1fe   : > { %v694_v43 = vpop.f32.mrf.mxu3 }
 0x1ff   : > { %v1439_v44 = vpop.eup %1438  ;;  %v961_v45 = vmul.f32 1.442695, %v920_v42  ;;  %v695_v46 = vadd.f32 %v1773_v25, %v694_v43 }
 0x200   : > { %v1441_v47 = vpop.eup %1440  ;;  %v1015_v48 = vadd.f32 1.0, %v1439_v44 }
 0x201   : > { %1078 = vst [vmem:[%s1839_s16 + $0x38] sm:$0xff] %v1441_v47  ;;  %1442 = vpow2.f32 %v961_v45  ;;  %v734_v50 = vmax.f32 %v695_v46, 0.0 }
 0x202   : > { %1444 = vrcp.f32 %v1015_v48  ;;  %v856_v51 = vpop.f32.mrf.mxu2 }
 0x203   : > { %v752_v52 = vpack.c.bf16 %v734_v50, %v733_v49  ;;  %v857_v53 = vadd.f32 %v1827_v10, %v856_v51 }
 0x205   : > { %v921_v54 = vsub.f32 0.0, %v857_v53  ;;  %1325 = vmatmul.msk.bf16.gmra.mxu3 %vm773_vm2, %v752_v52 }
 0x206   : > { %v697_v55 = vpop.f32.mrf.mxu3 }
 0x207   : > { %v1443_v56 = vpop.eup %1442  ;;  %v963_v57 = vmul.f32 1.442695, %v921_v54  ;;  %v698_v62 = vadd.f32 %v1773_v25, %v697_v55 }
 0x208   : > { %v1445_v58 = vpop.eup %1444  ;;  %v1016_v59 = vadd.f32 1.0, %v1443_v56 }
 0x209   : > { %1079 = vst [vmem:[%s1839_s16 + $0x40] sm:$0xff] %v1445_v58  ;;  %1446 = vpow2.f32 %v963_v57  ;;  %v735_v5 = vmax.f32 %v698_v62, 0.0 }
 0x20a   : > { %1448 = vrcp.f32 %v1016_v59  ;;  %v858_v60 = vpop.f32.mrf.mxu2 }
 0x20b   : > { %v859_v61 = vadd.f32 %v1827_v10, %v858_v60 }
 0x20d   : > { %v922_v63 = vsub.f32 0.0, %v859_v61 }
 0x20e   : > { %v699_v0 = vpop.f32.mrf.mxu3 }
 0x20f   : > { %v1447_v1 = vpop.eup %1446  ;;  %v965_v15 = vmul.f32 1.442695, %v922_v63  ;;  %v700_v2 = vadd.f32 %v1773_v25, %v699_v0 }
 0x210   : > { %v1449_v3 = vpop.eup %1448  ;;  %v1017_v4 = vadd.f32 1.0, %v1447_v1 }
 0x211   : > { %1080 = vst [vmem:[%s1839_s16 + $0x48] sm:$0xff] %v1449_v3  ;;  %1450 = vpow2.f32 %v965_v15  ;;  %v736_v6 = vmax.f32 %v700_v2, 0.0 }
 0x212   : > { %1452 = vrcp.f32 %v1017_v4  ;;  %v861_v7 = vpop.f32.mrf.mxu2 }
 0x213   : > { %v753_v8 = vpack.c.bf16 %v736_v6, %v735_v5  ;;  %v862_v9 = vadd.f32 %v1827_v10, %v861_v7 }
 0x215   : > { %v923_v11 = vsub.f32 0.0, %v862_v9  ;;  %1326 = vmatmul.msk.bf16.gmra.mxu3 %vm773_vm2, %v753_v8 }
 0x216   : > { %v702_v12 = vpop.f32.mrf.mxu3 }
 0x217   : > { %v1451_v13 = vpop.eup %1450  ;;  %v967_v14 = vmul.f32 1.442695, %v923_v11  ;;  %v703_v20 = vadd.f32 %v1773_v25, %v702_v12 }
 0x218   : > { %v1453_v16 = vpop.eup %1452  ;;  %v1018_v17 = vadd.f32 1.0, %v1451_v13 }
 0x219   : > { %1081 = vst [vmem:[%s1839_s16 + $0x50] sm:$0xff] %v1453_v16  ;;  %1454 = vpow2.f32 %v967_v14  ;;  %v737_v29 = vmax.f32 %v703_v20, 0.0 }
 0x21a   : > { %1456 = vrcp.f32 %v1018_v17  ;;  %v863_v18 = vpop.f32.mrf.mxu2 }
 0x21b   : > { %v864_v19 = vadd.f32 %v1827_v10, %v863_v18 }
 0x21d   : > { %v924_v21 = vsub.f32 0.0, %v864_v19 }
 0x21e   : > { %v704_v22 = vpop.f32.mrf.mxu3 }
 0x21f   : > { %v1455_v23 = vpop.eup %1454  ;;  %v969_v24 = vmul.f32 1.442695, %v924_v21  ;;  %v705_v26 = vadd.f32 %v1773_v25, %v704_v22 }
 0x220   : > { %v1457_v27 = vpop.eup %1456  ;;  %v1019_v28 = vadd.f32 1.0, %v1455_v23 }
 0x221   : > { %1082 = vst [vmem:[%s1839_s16 + $0x58] sm:$0xff] %v1457_v27  ;;  %1458 = vpow2.f32 %v969_v24  ;;  %v738_v30 = vmax.f32 %v705_v26, 0.0 }
 0x222   : > { %1460 = vrcp.f32 %v1019_v28  ;;  %v866_v31 = vpop.f32.mrf.mxu2 }
 0x223   : > { %v754_v32 = vpack.c.bf16 %v738_v30, %v737_v29  ;;  %v867_v33 = vadd.f32 %v1827_v10, %v866_v31 }
 0x225   : > { %v925_v34 = vsub.f32 0.0, %v867_v33  ;;  %1327 = vmatmul.msk.bf16.gmra.mxu3 %vm773_vm2, %v754_v32 }
 0x227   : > { %v1459_v35 = vpop.eup %1458  ;;  %v971_v36 = vmul.f32 1.442695, %v925_v34 }
 0x228   : > { %v1461_v37 = vpop.eup %1460  ;;  %v1020_v25 = vadd.f32 1.0, %v1459_v35 }
 0x229   : > { %1083 = vst [vmem:[%s1839_s16 + $0x60] sm:$0xff] %v1461_v37  ;;  %1462 = vpow2.f32 %v971_v36 }
 0x22a   : > { %1464 = vrcp.f32 %v1020_v25  ;;  %v868_v38 = vpop.f32.mrf.mxu2 }
 0x22b   : > { %v869_v39 = vadd.f32 %v1827_v10, %v868_v38 }
 0x22d   : > { %v926_v40 = vsub.f32 0.0, %v869_v39 }
 0x22f   : > { %v1463_v41 = vpop.eup %1462  ;;  %v973_v42 = vmul.f32 1.442695, %v926_v40 }
 0x230   : > { %v1465_v43 = vpop.eup %1464  ;;  %v1021_v44 = vadd.f32 1.0, %v1463_v41 }
 0x231   : > { %1084 = vst [vmem:[%s1839_s16 + $0x68] sm:$0xff] %v1465_v43  ;;  %1466 = vpow2.f32 %v973_v42 }
 0x232   : > { %1468 = vrcp.f32 %v1021_v44  ;;  %v871_v45 = vpop.f32.mrf.mxu2 }
 0x233   : > { %v872_v46 = vadd.f32 %v1827_v10, %v871_v45 }
 0x235   : > { %v927_v47 = vsub.f32 0.0, %v872_v46 }
 0x237   : > { %v1467_v48 = vpop.eup %1466  ;;  %v975_v49 = vmul.f32 1.442695, %v927_v47 }
 0x238   : > { %v1469_v50 = vpop.eup %1468  ;;  %v1022_v51 = vadd.f32 1.0, %v1467_v48 }
 0x239   : > { %1085 = vst [vmem:[%s1839_s16 + $0x70] sm:$0xff] %v1469_v50  ;;  %1470 = vpow2.f32 %v975_v49 }
 0x23a   : > { %1472 = vrcp.f32 %v1022_v51  ;;  %v873_v52 = vpop.f32.mrf.mxu2 }
 0x23b   : > { %v874_v53 = vadd.f32 %v1827_v10, %v873_v52 }
 0x23d   : > { %v928_v54 = vsub.f32 0.0, %v874_v53 }
 0x23f   : > { %v1471_v55 = vpop.eup %1470  ;;  %v977_v56 = vmul.f32 1.442695, %v928_v54 }
 0x240   : > { %v1473_v57 = vpop.eup %1472  ;;  %v1023_v58 = vadd.f32 1.0, %v1471_v55 }
 0x241   : > { %1086 = vst [vmem:[%s1839_s16 + $0x78] sm:$0xff] %v1473_v57  ;;  %1474 = vpow2.f32 %v977_v56 }
 0x242   : > { %1476 = vrcp.f32 %v1023_v58  ;;  %v876_v59 = vpop.f32.mrf.mxu2 }
 0x243   : > { %v877_v60 = vadd.f32 %v1827_v10, %v876_v59 }
 0x245   : > { %v929_v61 = vsub.f32 0.0, %v877_v60 }
 0x247   : > { %v1475_v62 = vpop.eup %1474  ;;  %v979_v63 = vmul.f32 1.442695, %v929_v61 }
 0x248   : > { %v1477_v0 = vpop.eup %1476  ;;  %v1024_v1 = vadd.f32 1.0, %v1475_v62 }
 0x249   : > { %1087 = vst [vmem:[%s1839_s16 + $0x80] sm:$0xff] %v1477_v0  ;;  %1478 = vpow2.f32 %v979_v63 }
 0x24a   : > { %1480 = vrcp.f32 %v1024_v1  ;;  %v878_v15 = vpop.f32.mrf.mxu2 }
 0x24b   : > { %v879_v2 = vadd.f32 %v1827_v10, %v878_v15 }
 0x24d   : > { %v930_v3 = vsub.f32 0.0, %v879_v2 }
 0x24f   : > { %v1479_v4 = vpop.eup %1478  ;;  %v981_v5 = vmul.f32 1.442695, %v930_v3 }
 0x250   : > { %v1481_v6 = vpop.eup %1480  ;;  %v1025_v7 = vadd.f32 1.0, %v1479_v4 }
 0x251   : > { %1088 = vst [vmem:[%s1839_s16 + $0x88] sm:$0xff] %v1481_v6  ;;  %1482 = vpow2.f32 %v981_v5 }
 0x252   : > { %1484 = vrcp.f32 %v1025_v7  ;;  %v881_v8 = vpop.f32.mrf.mxu2 }
 0x253   : > { %v882_v9 = vadd.f32 %v1827_v10, %v881_v8 }
 0x255   : > { %v931_v11 = vsub.f32 0.0, %v882_v9 }
 0x257   : > { %v1483_v12 = vpop.eup %1482  ;;  %v983_v13 = vmul.f32 1.442695, %v931_v11 }
 0x258   : > { %v1485_v14 = vpop.eup %1484  ;;  %v1026_v16 = vadd.f32 1.0, %v1483_v12 }
 0x259   : > { %1089 = vst [vmem:[%s1839_s16 + $0x90] sm:$0xff] %v1485_v14  ;;  %1486 = vpow2.f32 %v983_v13 }
 0x25a   : > { %1488 = vrcp.f32 %v1026_v16  ;;  %v883_v17 = vpop.f32.mrf.mxu2 }
 0x25b   : > { %v884_v18 = vadd.f32 %v1827_v10, %v883_v17 }
 0x25d   : > { %v932_v19 = vsub.f32 0.0, %v884_v18 }
 0x25f   : > { %v1487_v20 = vpop.eup %1486  ;;  %v985_v21 = vmul.f32 1.442695, %v932_v19 }
 0x260   : > { %v1489_v22 = vpop.eup %1488  ;;  %v1027_v23 = vadd.f32 1.0, %v1487_v20 }
 0x261   : > { %1090 = vst [vmem:[%s1839_s16 + $0x98] sm:$0xff] %v1489_v22  ;;  %1490 = vpow2.f32 %v985_v21 }
 0x262   : > { %1492 = vrcp.f32 %v1027_v23  ;;  %v886_v24 = vpop.f32.mrf.mxu2 }
 0x263   : > { %v887_v26 = vadd.f32 %v1827_v10, %v886_v24 }
 0x265   : > { %v933_v27 = vsub.f32 0.0, %v887_v26 }
 0x267   : > { %v1491_v28 = vpop.eup %1490  ;;  %v987_v29 = vmul.f32 1.442695, %v933_v27 }
 0x268   : > { %v1493_v30 = vpop.eup %1492  ;;  %v1028_v31 = vadd.f32 1.0, %v1491_v28 }
 0x269   : > { %1091 = vst [vmem:[%s1839_s16 + $0xa0] sm:$0xff] %v1493_v30  ;;  %1494 = vpow2.f32 %v987_v29 }
 0x26a   : > { %1496 = vrcp.f32 %v1028_v31  ;;  %v888_v32 = vpop.f32.mrf.mxu2 }
 0x26b   : > { %v889_v33 = vadd.f32 %v1827_v10, %v888_v32 }
 0x26d   : > { %v934_v34 = vsub.f32 0.0, %v889_v33 }
 0x26f   : > { %v1495_v35 = vpop.eup %1494  ;;  %v989_v36 = vmul.f32 1.442695, %v934_v34 }
 0x270   : > { %v1497_v37 = vpop.eup %1496  ;;  %v1029_v25 = vadd.f32 1.0, %v1495_v35 }
 0x271   : > { %1092 = vst [vmem:[%s1839_s16 + $0xa8] sm:$0xff] %v1497_v37  ;;  %1498 = vpow2.f32 %v989_v36 }
 0x272   : > { %1500 = vrcp.f32 %v1029_v25 }
 0x277   : > { %v1499_v38 = vpop.eup %1498 }
 0x278   : > { %v1501_v39 = vpop.eup %1500  ;;  %v1030_v40 = vadd.f32 1.0, %v1499_v38  ;;  %v891_v41 = vpop.f32.mrf.mxu3 }
 0x279   : > { %1093 = vst [vmem:[%s1839_s16 + $0xb0] sm:$0xff] %v1501_v39  ;;  %v892_v42 = vadd.f32 %v1827_v10, %v891_v41 }
 0x27a   : > { %1502 = vrcp.f32 %v1030_v40 }
 0x27b   : > { %v935_v43 = vsub.f32 0.0, %v892_v42 }
 0x27d   : > { %v991_v44 = vmul.f32 1.442695, %v935_v43 }
 0x27f   : > { %1504 = vpow2.f32 %v991_v44 }
 0x280   : > { %v1503_v45 = vpop.eup %1502  ;;  %v893_v46 = vpop.f32.mrf.mxu3 }
 0x281   : > { %1094 = vst [vmem:[%s1839_s16 + $0xb8] sm:$0xff] %v1503_v45  ;;  %v894_v47 = vadd.f32 %v1827_v10, %v893_v46 }
 0x283   : > { %v936_v48 = vsub.f32 0.0, %v894_v47 }
 0x285   : > { %v1505_v49 = vpop.eup %1504  ;;  %v993_v50 = vmul.f32 1.442695, %v936_v48 }
 0x286   : > { %v1031_v51 = vadd.f32 1.0, %v1505_v49 }
 0x287   : > { %1506 = vpow2.f32 %v993_v50 }
 0x288   : > { %1508 = vrcp.f32 %v1031_v51  ;;  %v896_v52 = vpop.f32.mrf.mxu3 }
 0x289   : > { %v897_v53 = vadd.f32 %v1827_v10, %v896_v52 }
 0x28b   : > { %v937_v54 = vsub.f32 0.0, %v897_v53 }
 0x28d   : > { %v1507_v55 = vpop.eup %1506  ;;  %v995_v56 = vmul.f32 1.442695, %v937_v54 }
 0x28e   : > { %v1509_v57 = vpop.eup %1508  ;;  %v1032_v58 = vadd.f32 1.0, %v1507_v55 }
 0x28f   : > { %1095 = vst [vmem:[%s1839_s16 + $0xc0] sm:$0xff] %v1509_v57  ;;  %1510 = vpow2.f32 %v995_v56 }
 0x290   : > { %1512 = vrcp.f32 %v1032_v58  ;;  %v898_v59 = vpop.f32.mrf.mxu3 }
 0x291   : > { %v899_v60 = vadd.f32 %v1827_v10, %v898_v59 }
 0x293   : > { %v938_v61 = vsub.f32 0.0, %v899_v60 }
 0x295   : > { %v1511_v62 = vpop.eup %1510  ;;  %v997_v63 = vmul.f32 1.442695, %v938_v61 }
 0x296   : > { %v1513_v0 = vpop.eup %1512  ;;  %v1033_v1 = vadd.f32 1.0, %v1511_v62 }
 0x297   : > { %1096 = vst [vmem:[%s1839_s16 + $0xc8] sm:$0xff] %v1513_v0  ;;  %1514 = vpow2.f32 %v997_v63 }
 0x298   : > { %1516 = vrcp.f32 %v1033_v1  ;;  %v901_v15 = vpop.f32.mrf.mxu3 }
 0x299   : > { %v902_v2 = vadd.f32 %v1827_v10, %v901_v15 }
 0x29b   : > { %v939_v3 = vsub.f32 0.0, %v902_v2 }
 0x29d   : > { %v1515_v4 = vpop.eup %1514  ;;  %v999_v5 = vmul.f32 1.442695, %v939_v3 }
 0x29e   : > { %v1517_v6 = vpop.eup %1516  ;;  %v1034_v7 = vadd.f32 1.0, %v1515_v4 }
 0x29f   : > { %1097 = vst [vmem:[%s1839_s16 + $0xd0] sm:$0xff] %v1517_v6  ;;  %1518 = vpow2.f32 %v999_v5 }
 0x2a0   : > { %1520 = vrcp.f32 %v1034_v7  ;;  %v903_v8 = vpop.f32.mrf.mxu3 }
 0x2a1   : > { %v904_v9 = vadd.f32 %v1827_v10, %v903_v8 }
 0x2a3   : > { %v940_v11 = vsub.f32 0.0, %v904_v9 }
 0x2a5   : > { %v1519_v12 = vpop.eup %1518  ;;  %v1001_v13 = vmul.f32 1.442695, %v940_v11 }
 0x2a6   : > { %v1521_v14 = vpop.eup %1520  ;;  %v1035_v16 = vadd.f32 1.0, %v1519_v12 }
 0x2a7   : > { %1098 = vst [vmem:[%s1839_s16 + $0xd8] sm:$0xff] %v1521_v14  ;;  %1522 = vpow2.f32 %v1001_v13 }
 0x2a8   : > { %1524 = vrcp.f32 %v1035_v16  ;;  %v906_v17 = vpop.f32.mrf.mxu3 }
 0x2a9   : > { %v907_v18 = vadd.f32 %v1827_v10, %v906_v17 }
 0x2ab   : > { %v941_v19 = vsub.f32 0.0, %v907_v18 }
 0x2ad   : > { %v1523_v20 = vpop.eup %1522  ;;  %v1003_v21 = vmul.f32 1.442695, %v941_v19 }
 0x2ae   : > { %v1525_v22 = vpop.eup %1524  ;;  %v1036_v23 = vadd.f32 1.0, %v1523_v20 }
 0x2af   : > { %1099 = vst [vmem:[%s1839_s16 + $0xe0] sm:$0xff] %v1525_v22  ;;  %1526 = vpow2.f32 %v1003_v21 }
 0x2b0   : > { %1528 = vrcp.f32 %v1036_v23  ;;  %v908_v24 = vpop.f32.mrf.mxu3 }
 0x2b1   : > { %v909_v26 = vadd.f32 %v1827_v10, %v908_v24 }
 0x2b3   : > { %v942_v27 = vsub.f32 0.0, %v909_v26 }
 0x2b5   : > { %v1527_v28 = vpop.eup %1526  ;;  %v1005_v29 = vmul.f32 1.442695, %v942_v27 }
 0x2b6   : > { %v1529_v30 = vpop.eup %1528  ;;  %v1037_v31 = vadd.f32 1.0, %v1527_v28 }
 0x2b7   : > { %1100 = vst [vmem:[%s1839_s16 + $0xe8] sm:$0xff] %v1529_v30  ;;  %1530 = vpow2.f32 %v1005_v29 }
 0x2b8   : > { %1532 = vrcp.f32 %v1037_v31 }
 0x2bd   : > { %v1531_v32 = vpop.eup %1530 }
 0x2be   : > { %v1533_v33 = vpop.eup %1532  ;;  %v1038_v34 = vadd.f32 1.0, %v1531_v32 }
 0x2bf   : > { %1101 = vst [vmem:[%s1839_s16 + $0xf0] sm:$0xff] %v1533_v33 }
 0x2c0   : > { %1534 = vrcp.f32 %v1038_v34 }
 0x2c6   : > { %v1535_v10 = vpop.eup %1534 }
 0x2c7   : > { %1102 = vst [vmem:[%s1839_s16 + $0xf8] sm:$0xff] %v1535_v10 }
 0x2c8   : > { %1563 = shalt.err (!%p1560_p3)
}
 0x2c9   : > { %s1600_s14 = smov 128   ;;  %s1601_s15 = smov 8  }
 0x2ca   : > { %1364 = dma.vmem_to_hbm [thread:$0]  (%p1670_p5), %s1117_s30, 4096, %s1119_s6, %s1104_s7, %s1600_s14, %s1600_s14, %s1601_s15  }
 0x2cb PF: > { %p1370_p4 = scmp.ge.s32.totalorder %s1598_s21, 2  ;;  %s1133_s16 = sand.u32 1, %s1586_s18  }
 0x2cc   : > { %s1134_s17 = scalar_lea.sflag [#allocation3], %s1133_s16 }
 0x2cd   : > { %p1367_p7 = pnand %p1370_p4, %p1674_p6 }
 0x2cf   : > { %p1368_p8 = pneg %p1367_p7 }
 0x2d1   : > { %1581 = dma.done.wait (%p1368_p8), %s1134_s17, 4096  }
 0x2d2   : > { %1583 = vsyncadd (%p1368_p8), %s1134_s17, 4294963200  ;;  %p15_p9 = scmp.ge.s32.totalorder %s1657_s24, 4   ;;  %s1961_s18 = smov %s1590_s19 }
 0x2d3   : > { %s1962_s19 = smov %s1594_s20  ;;  %s1963_s20 = smov %s1668_s27 }
 0x2d4   : > { %s1964_s21 = smov %s1657_s24  ;;  %17 = sbr.rel (!%p15_p9) target bundleno = 3 (0x3), region = 75 }
 0x2d9   :  { %1140 = vsyncpa [#allocation3], 1 }
 0x2da   :  { %1142 = vsyncpa [#allocation3 + $0x1], 1 }

</bundles_post_ra>
